<compile_context>
chip_gen: v7x
topology: tpu7x:2x2x1
jax: 0.10.0
libtpu: 0.0.40
codegen_flags: <defaults>
</compile_context>

<pallas_src>
import math
import jax
import jax.numpy as jnp
from jax.experimental import pallas as pl
from jax.experimental.pallas import tpu as pltpu


def _round_up(x, m):
    return ((x + m - 1) // m) * m


def _patch_embed_kernel(patches_ref, w_ref, b_ref, out_ref):
    # patches_ref: (TM, K), w_ref: (K, Ep), b_ref: (1, Ep), out_ref: (TM, Ep)
    acc = jnp.dot(patches_ref[...], w_ref[...],
                  preferred_element_type=jnp.float32)
    acc = acc + b_ref[...].astype(jnp.float32)
    out_ref[...] = acc.astype(out_ref.dtype)


def _build_call(*, M, K, Ep, TM, out_dtype, cost, optimized):
    """Builds the pallas_call. optimized=False drops single-buffered resident
    operands and input fusion (safe fallback for older runtimes)."""
    resident_kwargs = {}
    compiler_kwargs = dict(dimension_semantics=("parallel",))  # megacore/v7x
    if optimized:
        # Weight/bias have a constant index_map -> fetched once; one VMEM
        # buffer is enough.
        resident_kwargs = dict(pipeline_mode=pl.Buffered(1))
        # Allow XLA to fuse the unfold (reshape/transpose/cast) into the
        # patches operand of the custom call.
        compiler_kwargs["allow_input_fusion"] = [True, False, False]

    return pl.pallas_call(
        _patch_embed_kernel,
        out_shape=jax.ShapeDtypeStruct((M, Ep), out_dtype),
        grid=(pl.cdiv(M, TM),),
        in_specs=[
            # Patch tiles: pipelined (double-buffered) over the M axis.
            pl.BlockSpec((TM, K), lambda i: (i, 0)),
            # Weight: whole (K, Ep) resident in VMEM, DMA'd once.
            pl.BlockSpec((K, Ep), lambda i: (0, 0), **resident_kwargs),
            # Bias: resident in VMEM, DMA'd once.
            pl.BlockSpec((1, Ep), lambda i: (0, 0), **resident_kwargs),
        ],
        out_specs=pl.BlockSpec((TM, Ep), lambda i: (i, 0)),
        compiler_params=pltpu.CompilerParams(**compiler_kwargs),
        cost_estimate=cost,
    )


def patch_embed_forward(x, weight, bias, patch_size, *,
                        compute_dtype=jnp.bfloat16, out_dtype=None,
                        scanpath_type="rowwise", tm=512):
    """PatchEmbed forward (flatten=True, norm_layer=None -> Identity).

    x: (B, C, H, W) NCHW; weight: (E, C, ph, pw); bias: (E,).
    Returns (B, num_patches, E), matching the PyTorch module.

    compute_dtype: MXU operand dtype (bf16 fast path on v6e/v7x; differs from
      an fp32 conv at ~1e-3..1e-2 abs). Pass None for fp32 operands.
    out_dtype: output dtype; defaults to x.dtype (PyTorch semantics). Pass
      jnp.bfloat16 to halve output HBM traffic when downstream is bf16.
    """
    B, C, H, W = x.shape
    ph, pw = patch_size
    E = weight.shape[0]
    assert H % ph == 0 and W % pw == 0
    Gh, Gw = H // ph, W // pw
    num_patches = Gh * Gw
    K = C * ph * pw
    M = B * num_patches
    out_dtype = x.dtype if out_dtype is None else out_dtype

    # --- unfold: (B,C,Gh,ph,Gw,pw) -> (B, tokens, C, ph, pw) -> (M, K) ------
    xr = x.reshape(B, C, Gh, ph, Gw, pw)
    if scanpath_type == "rowwise":
        perm = (0, 2, 4, 1, 3, 5)      # token order (gh, gw): conv.flatten(2)
    elif scanpath_type == "colwise":
        perm = (0, 4, 2, 1, 3, 5)      # token order (gw, gh): transpose(2,3)
    else:
        raise ValueError(f"unknown scanpath_type: {scanpath_type}")
    patches = jnp.transpose(xr, perm).reshape(M, K)

    # conv weight (E, C, ph, pw) -> matmul weight (K, E); bias -> (1, E)
    w_mat = weight.reshape(E, K).T
    b_mat = bias.reshape(1, E)

    if compute_dtype is not None:
        patches = patches.astype(compute_dtype)
        w_mat = w_mat.astype(compute_dtype)

    # Pad E (weight/bias only; both tiny) to a lane multiple so output stores
    # stay lane-dense.  No-op for the usual embed dims (multiples of 128).
    Ep = _round_up(E, 128)
    if Ep != E:
        w_mat = jnp.pad(w_mat, ((0, 0), (0, Ep - E)))
        b_mat = jnp.pad(b_mat, ((0, 0), (0, Ep - E)))

    # --- M tile size: large tiles, auto-shrunk to a safe VMEM budget --------
    in_bytes = jnp.dtype(patches.dtype).itemsize
    w_bytes = jnp.dtype(w_mat.dtype).itemsize
    b_bytes = jnp.dtype(b_mat.dtype).itemsize
    out_bytes = jnp.dtype(out_dtype).itemsize

    TM = min(tm, _round_up(M, 16))          # >=16 for bf16 sublane packing
    vmem_budget = 12 * 1024 * 1024          # fits v5e 16 MiB default scope

    def vmem_estimate(tm_):
        return (2 * tm_ * K * in_bytes                   # patches (2 bufs)
                + 2 * tm_ * Ep * out_bytes               # output (2 bufs)
                + 2 * (K * Ep * w_bytes + Ep * b_bytes)  # weight+bias (worst)
                )

    while TM > 128 and vmem_estimate(TM) > vmem_budget:
        TM = max(128, TM // 2)

    cost = pl.CostEstimate(
        flops=2 * M * K * E,
        transcendentals=0,
        bytes_accessed=(M * K * in_bytes + K * E * w_bytes
                        + E * b_bytes + M * E * out_bytes),
    )

    try:
        out = _build_call(M=M, K=K, Ep=Ep, TM=TM, out_dtype=out_dtype,
                          cost=cost, optimized=True)(patches, w_mat, b_mat)
    except Exception:
        # Fallback: default double-buffering, no input fusion.
        out = _build_call(M=M, K=K, Ep=Ep, TM=TM, out_dtype=out_dtype,
                          cost=cost, optimized=False)(patches, w_mat, b_mat)

    if Ep != E:
        out = out[:, :E]
    return out.reshape(B, num_patches, E)


if __name__ == "__main__":
    # Small shapes consistent with the module (in_chans=3 default):
    #   img_size=16, patch_size=4, in_chans=3, embed_dim=32
    B, C, H, W = 2, 3, 16, 16
    ph = pw = 4
    E = 32

    key = jax.random.PRNGKey(0)
    kx, kw, kb = jax.random.split(key, 3)

    x = jax.random.normal(kx, (B, C, H, W), dtype=jnp.float32)

    # Deterministic Conv2d-like uniform init, bound 1/sqrt(fan_in).
    fan_in = C * ph * pw
    bound = 1.0 / math.sqrt(fan_in)
    weight = jax.random.uniform(kw, (E, C, ph, pw), minval=-bound,
                                maxval=bound, dtype=jnp.float32)
    bias = jax.random.uniform(kb, (E,), minval=-bound, maxval=bound,
                              dtype=jnp.float32)

    out = patch_embed_forward(x, weight, bias, (ph, pw))
    out = jax.block_until_ready(out)

    # Reference: lax.conv (same semantics as nn.Conv2d with stride=patch),
    # then flatten(2).transpose(1, 2).
    ref = jax.lax.conv_general_dilated(
        x, weight, window_strides=(ph, pw), padding="VALID",
        dimension_numbers=("NCHW", "OIHW", "NCHW"))
    ref = ref + bias[None, :, None, None]
    ref = ref.reshape(B, E, -1).transpose(0, 2, 1)

    assert out.shape == (B, (H // ph) * (W // pw), E)
    # bf16 operands (f32 accumulate) vs fp32 reference -> loose tolerance.
    assert jnp.allclose(out, ref, atol=3e-2, rtol=3e-2)
    print("KERNEL_OK")
</pallas_src>

<mosaic_0001>
module attributes {stable_mosaic.version = 11 : i64} {
  func.func @_patch_embed_kernel(%arg0: i32, %arg1: memref<32x48xbf16, #tpu.memory_space<vmem>>, %arg2: memref<48x128xbf16, #tpu.memory_space<vmem>>, %arg3: memref<1x128xf32, #tpu.memory_space<vmem>>, %arg4: memref<32x128xf32, #tpu.memory_space<vmem>>) attributes {dimension_semantics = [#tpu.dimension_semantics<parallel>], iteration_bounds = array<i64: 1>, scalar_prefetch = 0 : i64, scratch_operands = 0 : i64, tpu.core_type = #tpu.core_type<tc>, window_params = [{transform_indices = @transform_0, window_bounds = array<i64: 32, 48>}, {pipeline_mode = #tpu.pipeline_mode<synchronous>, transform_indices = @transform_1, window_bounds = array<i64: 48, 128>}, {pipeline_mode = #tpu.pipeline_mode<synchronous>, transform_indices = @transform_2, window_bounds = array<i64: 1, 128>}, {transform_indices = @transform_3, window_bounds = array<i64: 32, 128>}]} {
    %c0 = arith.constant 0 : index
    %c0_0 = arith.constant 0 : index
    %0 = vector.load %arg1[%c0, %c0_0] : memref<32x48xbf16, #tpu.memory_space<vmem>>, vector<32x48xbf16>
    %c0_1 = arith.constant 0 : index
    %c0_2 = arith.constant 0 : index
    %1 = vector.load %arg2[%c0_1, %c0_2] : memref<48x128xbf16, #tpu.memory_space<vmem>>, vector<48x128xbf16>
    %cst = arith.constant dense<0.000000e+00> : vector<32x128xf32>
    %2 = tpu.matmul %0, %1, %cst {dimension_numbers = #tpu.dot_dimension_numbers<[1], [0], [0], [1], [0, 0, 1, 1], [], []>} : vector<32x48xbf16>, vector<48x128xbf16>, vector<32x128xf32> -> vector<32x128xf32>
    %c0_3 = arith.constant 0 : index
    %c0_4 = arith.constant 0 : index
    %3 = vector.load %arg3[%c0_3, %c0_4] : memref<1x128xf32, #tpu.memory_space<vmem>>, vector<1x128xf32>
    %4 = vector.broadcast %3 : vector<1x128xf32> to vector<32x128xf32>
    %5 = arith.addf %2, %4 : vector<32x128xf32>
    %c0_5 = arith.constant 0 : index
    %c0_6 = arith.constant 0 : index
    %6 = vector.load %arg4[%c0_5, %c0_6] : memref<32x128xf32, #tpu.memory_space<vmem>>, vector<32x128xf32>
    tpu.vector_store %arg4[%c0_5, %c0_6], %5 {strides = array<i32>} : memref<32x128xf32, #tpu.memory_space<vmem>>, vector<32x128xf32>,
    return
  }
  func.func @transform_0(%arg0: i32) -> (i32, i32) {
    %c0_i32 = arith.constant 0 : i32
    %c0_i32_0 = arith.constant 0 : i32
    return %arg0, %c0_i32 : i32, i32
  }
  func.func @transform_1(%arg0: i32) -> (i32, i32) {
    %c0_i32 = arith.constant 0 : i32
    %c0_i32_0 = arith.constant 0 : i32
    %c0_i32_1 = arith.constant 0 : i32
    return %c0_i32, %c0_i32_0 : i32, i32
  }
  func.func @transform_2(%arg0: i32) -> (i32, i32) {
    %c0_i32 = arith.constant 0 : i32
    %c0_i32_0 = arith.constant 0 : i32
    %c0_i32_1 = arith.constant 0 : i32
    return %c0_i32, %c0_i32_0 : i32, i32
  }
  func.func @transform_3(%arg0: i32) -> (i32, i32) {
    %c0_i32 = arith.constant 0 : i32
    %c0_i32_0 = arith.constant 0 : i32
    return %arg0, %c0_i32 : i32, i32
  }
}

module attributes {stable_mosaic.version = 11 : i64} {
  func.func @_patch_embed_kernel(%arg0: i32, %arg1: memref<32x48xbf16, #tpu.memory_space<vmem>>, %arg2: memref<48x128xbf16, #tpu.memory_space<vmem>>, %arg3: memref<1x128xf32, #tpu.memory_space<vmem>>, %arg4: memref<32x128xf32, #tpu.memory_space<vmem>>) attributes {dimension_semantics = [#tpu.dimension_semantics<parallel>], iteration_bounds = array<i64: 1>, scalar_prefetch = 0 : i64, scratch_operands = 0 : i64, tpu.core_type = #tpu.core_type<tc>, window_params = [{transform_indices = @transform_0, window_bounds = array<i64: 32, 48>}, {pipeline_mode = #tpu.pipeline_mode<synchronous>, transform_indices = @transform_1, window_bounds = array<i64: 48, 128>}, {pipeline_mode = #tpu.pipeline_mode<synchronous>, transform_indices = @transform_2, window_bounds = array<i64: 1, 128>}, {transform_indices = @transform_3, window_bounds = array<i64: 32, 128>}]} {
    %c0 = arith.constant 0 : index
    %c0_0 = arith.constant 0 : index
    %0 = vector.load %arg1[%c0, %c0_0] : memref<32x48xbf16, #tpu.memory_space<vmem>>, vector<32x48xbf16>
    %c0_1 = arith.constant 0 : index
    %c0_2 = arith.constant 0 : index
    %1 = vector.load %arg2[%c0_1, %c0_2] : memref<48x128xbf16, #tpu.memory_space<vmem>>, vector<48x128xbf16>
    %cst = arith.constant dense<0.000000e+00> : vector<32x128xf32>
    %2 = tpu.matmul %0, %1, %cst {dimension_numbers = #tpu.dot_dimension_numbers<[1], [0], [0], [1], [0, 0, 1, 1], [], []>} : vector<32x48xbf16>, vector<48x128xbf16>, vector<32x128xf32> -> vector<32x128xf32>
    %c0_3 = arith.constant 0 : index
    %c0_4 = arith.constant 0 : index
    %3 = vector.load %arg3[%c0_3, %c0_4] : memref<1x128xf32, #tpu.memory_space<vmem>>, vector<1x128xf32>
    %4 = vector.broadcast %3 : vector<1x128xf32> to vector<32x128xf32>
    %5 = arith.addf %2, %4 : vector<32x128xf32>
    %c0_5 = arith.constant 0 : index
    %c0_6 = arith.constant 0 : index
    %6 = vector.load %arg4[%c0_5, %c0_6] : memref<32x128xf32, #tpu.memory_space<vmem>>, vector<32x128xf32>
    tpu.vector_store %arg4[%c0_5, %c0_6], %5 {strides = array<i32>} : memref<32x128xf32, #tpu.memory_space<vmem>>, vector<32x128xf32>,
    return
  }
  func.func @transform_0(%arg0: i32) -> (i32, i32) {
    %c0_i32 = arith.constant 0 : i32
    %c0_i32_0 = arith.constant 0 : i32
    return %arg0, %c0_i32 : i32, i32
  }
  func.func @transform_1(%arg0: i32) -> (i32, i32) {
    %c0_i32 = arith.constant 0 : i32
    %c0_i32_0 = arith.constant 0 : i32
    %c0_i32_1 = arith.constant 0 : i32
    return %c0_i32, %c0_i32_0 : i32, i32
  }
  func.func @transform_2(%arg0: i32) -> (i32, i32) {
    %c0_i32 = arith.constant 0 : i32
    %c0_i32_0 = arith.constant 0 : i32
    %c0_i32_1 = arith.constant 0 : i32
    return %c0_i32, %c0_i32_0 : i32, i32
  }
  func.func @transform_3(%arg0: i32) -> (i32, i32) {
    %c0_i32 = arith.constant 0 : i32
    %c0_i32_0 = arith.constant 0 : i32
    return %arg0, %c0_i32 : i32, i32
  }
}

</mosaic_0001>

<bundles_post_ra>
// kernel: tpu_custom_call.1
= control target key start
LH: loop header
LB: loop body
LE: loop exit
PB: predicated region body
PF: predicated region fallthrough
CT: control target
= control target key end

     0   :  { %8 = vsyncpa [#allocation3], 0  ;;  %s340_s0 = inlined_call_operand.hbm [shape: bf16[32,48], index: 0, kind: input, shape index: {}]   ;;  %s341_s1 = inlined_call_operand.hbm [shape: bf16[48,128], index: 1, kind: input, shape index: {}]   ;;  %s342_s2 = inlined_call_operand.vmem [shape: f32[1,128], index: 2, kind: input, shape index: {}]   ;;  %s343_s3 = inlined_call_operand.hbm [shape: f32[32,128], index: 3, kind: output, shape index: {}]  }
   0x1   :  { %9 = vsyncpa [#allocation6], 0 }
   0x2   :  { %10 = vsyncpa [#allocation4], 0  ;;  %s274_s12 = smov [#allocation2]   ;;  %s202_s16 = scalar_lea.hbm %s340_s0, 256 }
   0x3   :  { %s16_s13 = sshll.u32 %s274_s12, 4  ;;  %p203_p0 = scmp.ne.s32.totalorder %s340_s0, %s202_s16  ;;  %s17_s13 = int_to_ptr.vmem [resolvable:$true] %s16_s13 }
   0x4   :  { %p206_p1 = scmp.lt.u32.totalorder %s202_s16, %s340_s0 }
   0x6   :  { %p208_p2 = pnand %p206_p1, %p203_p0 }
   0x8   :  { %211 = shalt.err (!%p208_p2)
}
   0x9   :  { %s212_s21 = scalar_lea.vmem %s17_s13, 256  ;;  %p217_p4 = scmp.lt.s32.totalorder %s17_s13, %s17_s13 }
   0xa   :  { %p213_p3 = scmp.ne.s32.totalorder %s17_s13, %s212_s21  ;;  %p218_p5 = scmp.lt.s32.totalorder %s212_s21, %s212_s21 }
   0xc   :  { %p219_p6 = por %p218_p5, %p217_p4 }
   0xe   :  { %p220_p7 = pnand %p219_p6, %p213_p3 }
  0x10   :  { %223 = shalt.err (!%p220_p7)
}
  0x11   :  { %s275_s22 = smov 64   ;;  %s276_s23 = smov 4  }
  0x12   :  { %22 = dma.hbm_to_vmem [thread:$0]  %s340_s0, 256, %s17_s13, [#allocation3], %s275_s22, %s275_s22, %s276_s23  }
  0x13   :  { %s277_s26 = smov [#allocation5]   ;;  %s224_s30 = scalar_lea.hbm %s341_s1, 384 }
  0x14   :  { %s28_s27 = sshll.u32 %s277_s26, 4  ;;  %p225_p8 = scmp.ne.s32.totalorder %s341_s1, %s224_s30  ;;  %s29_s27 = int_to_ptr.vmem [resolvable:$true] %s28_s27 }
  0x15   :  { %p228_p9 = scmp.lt.u32.totalorder %s224_s30, %s341_s1 }
  0x17   :  { %p230_p10 = pnand %p228_p9, %p225_p8 }
  0x19   :  { %233 = shalt.err (!%p230_p10)
}
  0x1a   :  { %s234_s8 = scalar_lea.vmem %s29_s27, 384  ;;  %p239_p12 = scmp.lt.s32.totalorder %s29_s27, %s29_s27 }
  0x1b   :  { %p235_p11 = scmp.ne.s32.totalorder %s29_s27, %s234_s8  ;;  %p240_p13 = scmp.lt.s32.totalorder %s234_s8, %s234_s8 }
  0x1d   :  { %p241_p0 = por %p240_p13, %p239_p12 }
  0x1f   :  { %p242_p1 = pnand %p241_p0, %p235_p11 }
  0x21   :  { %245 = shalt.err (!%p242_p1)
}
  0x22   :  { %34 = dma.hbm_to_vmem [thread:$0]  %s341_s1, 384, %s29_s27, [#allocation6], %s275_s22, %s275_s22, %s276_s23  }
  0x23   :  { %268 = dma.done.wait [#allocation3], 256  }
  0x24   :  { %269 = vsyncadd [#allocation3], 4294967040 }
  0x25   :  { %270 = dma.done.wait [#allocation6], 384  }
  0x26   :  { %271 = vsyncadd [#allocation6], 4294966912  ;;  %v197_v0 = vld [vmem:[#allocation5] sm:$0xff]   ;;  %v198_v1 = vld [vmem:[#allocation5 + $0x8] sm:$0xff]   ;;  %vm89_vm0 = vcmask 392192   ;;  %s278_s11 = smov [#allocation7]  }
  0x27   :  { %180 = vmatprep.subr.bf16.mxu0 %v197_v0  ;;  %v200_v2 = vld [vmem:[#allocation2] sm:$0xff]   ;;  %v201_v4 = vld [vmem:[#allocation2 + $0x8] sm:$0xff]   ;;  %s154_s12 = sshll.u32 %s278_s11, 4  ;;  %s155_s12 = int_to_ptr.vmem [resolvable:$true] %s154_s12 }
  0x28   :  { %181 = vmatpush3.bf16.msra.mxu0 %v197_v0  ;;  %v199_v3 = vld [vmem:[#allocation5 + $0x10] sm:$0xff]   ;;  %186 = vmatprep.mubr.msk.bf16.mxu0 %vm89_vm0, %v200_v2  ;;  %s246_s13 = scalar_lea.vmem %s155_s12, 512  ;;  %p251_p3 = scmp.lt.s32.totalorder %s155_s12, %s155_s12 }
  0x29   :  { %182 = vmatprep.subr.bf16.mxu0 %v198_v1  ;;  %v167_v5 = vld [vmem:[%s342_s2] ss:$0 sm:$0xff]  ;;  %p247_p2 = scmp.ne.s32.totalorder %s155_s12, %s246_s13  ;;  %p252_p4 = scmp.lt.s32.totalorder %s246_s13, %s246_s13 }
  0x2b   :  { %p253_p5 = por %p252_p4, %p251_p3 }
  0x2c   :  { %183 = vmatpush3.bf16.msra.mxu0 %v198_v1 }
  0x2d   :  { %184 = vmatprep.subr.bf16.mxu0 %v199_v3  ;;  %p254_p6 = pnand %p253_p5, %p247_p2 }
  0x30   :  { %185 = vmatpush3.bf16.msra.mxu0 %v199_v3 }
  0x33   :  { %187 = vmatmul.mubr.msk.bf16.vlgmr.msra.gmra.mrb[0].mxu0 %vm89_vm0, %v201_v4 }
 0x106   :  { %v188_v6 = vpop.f32.mrb[0].mxu0 }
 0x107   :  { %v139_v7 = vadd.f32 %v188_v6, %v167_v5  ;;  %v130_v8 = vpop.f32.mrb[1].mxu0 }
 0x108   :  { %v131_v9 = vadd.f32 %v167_v5, %v130_v8  ;;  %v189_v10 = vpop.f32.mrb[2].mxu0 }
 0x109   :  { %147 = vst [vmem:[#allocation7 + $0x10] sm:$0xff] %v139_v7  ;;  %v142_v11 = vadd.f32 %v189_v10, %v167_v5  ;;  %v133_v12 = vpop.f32.mrb[3].mxu0 }
 0x10a   :  { %145 = vst [vmem:[#allocation7] sm:$0xff] %v131_v9  ;;  %v134_v13 = vadd.f32 %v167_v5, %v133_v12 }
 0x10b   :  { %148 = vst [vmem:[#allocation7 + $0x18] sm:$0xff] %v142_v11 }
 0x10c   :  { %146 = vst [vmem:[#allocation7 + $0x8] sm:$0xff] %v134_v13 }
 0x10d   :  { %257 = shalt.err (!%p254_p6)
}
 0x10e   :  { %s258_s15 = scalar_lea.hbm %s343_s3, 512 }
 0x10f   :  { %p259_p7 = scmp.ne.s32.totalorder %s343_s3, %s258_s15  ;;  %p262_p8 = scmp.lt.u32.totalorder %s258_s15, %s343_s3 }
 0x111   :  { %p264_p9 = pnand %p262_p8, %p259_p7 }
 0x113   :  { %267 = shalt.err (!%p264_p9)
}
 0x114   :  { %s279_s20 = smov 128   ;;  %s280_s21 = smov 8  }
 0x115   :  { %160 = dma.vmem_to_hbm [thread:$0]  %s155_s12, 512, %s343_s3, [#allocation4], %s279_s20, %s279_s20, %s280_s21  }
 0x116   :  { %272 = dma.done.wait [#allocation4], 512  }
 0x117   :  { %273 = vsyncadd [#allocation4], 4294966784 }
 0x118   :  { %164 = vsyncpa [#allocation3], 1 }
 0x119   :  { %165 = vsyncpa [#allocation6], 1 }
 0x11a   :  { %166 = vsyncpa [#allocation4], 1 }

// kernel: tpu_custom_call.1
= control target key start
LH: loop header
LB: loop body
LE: loop exit
PB: predicated region body
PF: predicated region fallthrough
CT: control target
= control target key end

     0   :  { %8 = vsyncpa [#allocation3], 0  ;;  %s340_s0 = inlined_call_operand.hbm [shape: bf16[32,48], index: 0, kind: input, shape index: {}]   ;;  %s341_s1 = inlined_call_operand.hbm [shape: bf16[48,128], index: 1, kind: input, shape index: {}]   ;;  %s342_s2 = inlined_call_operand.vmem [shape: f32[1,128], index: 2, kind: input, shape index: {}]   ;;  %s343_s3 = inlined_call_operand.hbm [shape: f32[32,128], index: 3, kind: output, shape index: {}]  }
   0x1   :  { %9 = vsyncpa [#allocation6], 0 }
   0x2   :  { %10 = vsyncpa [#allocation4], 0  ;;  %s274_s12 = smov [#allocation2]   ;;  %s202_s16 = scalar_lea.hbm %s340_s0, 256 }
   0x3   :  { %s16_s13 = sshll.u32 %s274_s12, 4  ;;  %p203_p0 = scmp.ne.s32.totalorder %s340_s0, %s202_s16  ;;  %s17_s13 = int_to_ptr.vmem [resolvable:$true] %s16_s13 }
   0x4   :  { %p206_p1 = scmp.lt.u32.totalorder %s202_s16, %s340_s0 }
   0x6   :  { %p208_p2 = pnand %p206_p1, %p203_p0 }
   0x8   :  { %211 = shalt.err (!%p208_p2)
}
   0x9   :  { %s212_s21 = scalar_lea.vmem %s17_s13, 256  ;;  %p217_p4 = scmp.lt.s32.totalorder %s17_s13, %s17_s13 }
   0xa   :  { %p213_p3 = scmp.ne.s32.totalorder %s17_s13, %s212_s21  ;;  %p218_p5 = scmp.lt.s32.totalorder %s212_s21, %s212_s21 }
   0xc   :  { %p219_p6 = por %p218_p5, %p217_p4 }
   0xe   :  { %p220_p7 = pnand %p219_p6, %p213_p3 }
  0x10   :  { %223 = shalt.err (!%p220_p7)
}
  0x11   :  { %s275_s22 = smov 64   ;;  %s276_s23 = smov 4  }
  0x12   :  { %22 = dma.hbm_to_vmem [thread:$0]  %s340_s0, 256, %s17_s13, [#allocation3], %s275_s22, %s275_s22, %s276_s23  }
  0x13   :  { %s277_s26 = smov [#allocation5]   ;;  %s224_s30 = scalar_lea.hbm %s341_s1, 384 }
  0x14   :  { %s28_s27 = sshll.u32 %s277_s26, 4  ;;  %p225_p8 = scmp.ne.s32.totalorder %s341_s1, %s224_s30  ;;  %s29_s27 = int_to_ptr.vmem [resolvable:$true] %s28_s27 }
  0x15   :  { %p228_p9 = scmp.lt.u32.totalorder %s224_s30, %s341_s1 }
  0x17   :  { %p230_p10 = pnand %p228_p9, %p225_p8 }
  0x19   :  { %233 = shalt.err (!%p230_p10)
}
  0x1a   :  { %s234_s8 = scalar_lea.vmem %s29_s27, 384  ;;  %p239_p12 = scmp.lt.s32.totalorder %s29_s27, %s29_s27 }
  0x1b   :  { %p235_p11 = scmp.ne.s32.totalorder %s29_s27, %s234_s8  ;;  %p240_p13 = scmp.lt.s32.totalorder %s234_s8, %s234_s8 }
  0x1d   :  { %p241_p0 = por %p240_p13, %p239_p12 }
  0x1f   :  { %p242_p1 = pnand %p241_p0, %p235_p11 }
  0x21   :  { %245 = shalt.err (!%p242_p1)
}
  0x22   :  { %34 = dma.hbm_to_vmem [thread:$0]  %s341_s1, 384, %s29_s27, [#allocation6], %s275_s22, %s275_s22, %s276_s23  }
  0x23   :  { %268 = dma.done.wait [#allocation3], 256  }
  0x24   :  { %269 = vsyncadd [#allocation3], 4294967040 }
  0x25   :  { %270 = dma.done.wait [#allocation6], 384  }
  0x26   :  { %271 = vsyncadd [#allocation6], 4294966912  ;;  %v197_v0 = vld [vmem:[#allocation5] sm:$0xff]   ;;  %v198_v1 = vld [vmem:[#allocation5 + $0x8] sm:$0xff]   ;;  %vm89_vm0 = vcmask 392192   ;;  %s278_s11 = smov [#allocation7]  }
  0x27   :  { %180 = vmatprep.subr.bf16.mxu0 %v197_v0  ;;  %v200_v2 = vld [vmem:[#allocation2] sm:$0xff]   ;;  %v201_v4 = vld [vmem:[#allocation2 + $0x8] sm:$0xff]   ;;  %s154_s12 = sshll.u32 %s278_s11, 4  ;;  %s155_s12 = int_to_ptr.vmem [resolvable:$true] %s154_s12 }
  0x28   :  { %181 = vmatpush3.bf16.msra.mxu0 %v197_v0  ;;  %v199_v3 = vld [vmem:[#allocation5 + $0x10] sm:$0xff]   ;;  %186 = vmatprep.mubr.msk.bf16.mxu0 %vm89_vm0, %v200_v2  ;;  %s246_s13 = scalar_lea.vmem %s155_s12, 512  ;;  %p251_p3 = scmp.lt.s32.totalorder %s155_s12, %s155_s12 }
  0x29   :  { %182 = vmatprep.subr.bf16.mxu0 %v198_v1  ;;  %v167_v5 = vld [vmem:[%s342_s2] ss:$0 sm:$0xff]  ;;  %p247_p2 = scmp.ne.s32.totalorder %s155_s12, %s246_s13  ;;  %p252_p4 = scmp.lt.s32.totalorder %s246_s13, %s246_s13 }
  0x2b   :  { %p253_p5 = por %p252_p4, %p251_p3 }
  0x2c   :  { %183 = vmatpush3.bf16.msra.mxu0 %v198_v1 }
  0x2d   :  { %184 = vmatprep.subr.bf16.mxu0 %v199_v3  ;;  %p254_p6 = pnand %p253_p5, %p247_p2 }
  0x30   :  { %185 = vmatpush3.bf16.msra.mxu0 %v199_v3 }
  0x33   :  { %187 = vmatmul.mubr.msk.bf16.vlgmr.msra.gmra.mrb[0].mxu0 %vm89_vm0, %v201_v4 }
 0x106   :  { %v188_v6 = vpop.f32.mrb[0].mxu0 }
 0x107   :  { %v139_v7 = vadd.f32 %v188_v6, %v167_v5  ;;  %v130_v8 = vpop.f32.mrb[1].mxu0 }
 0x108   :  { %v131_v9 = vadd.f32 %v167_v5, %v130_v8  ;;  %v189_v10 = vpop.f32.mrb[2].mxu0 }
 0x109   :  { %147 = vst [vmem:[#allocation7 + $0x10] sm:$0xff] %v139_v7  ;;  %v142_v11 = vadd.f32 %v189_v10, %v167_v5  ;;  %v133_v12 = vpop.f32.mrb[3].mxu0 }
 0x10a   :  { %145 = vst [vmem:[#allocation7] sm:$0xff] %v131_v9  ;;  %v134_v13 = vadd.f32 %v167_v5, %v133_v12 }
 0x10b   :  { %148 = vst [vmem:[#allocation7 + $0x18] sm:$0xff] %v142_v11 }
 0x10c   :  { %146 = vst [vmem:[#allocation7 + $0x8] sm:$0xff] %v134_v13 }
 0x10d   :  { %257 = shalt.err (!%p254_p6)
}
 0x10e   :  { %s258_s15 = scalar_lea.hbm %s343_s3, 512 }
 0x10f   :  { %p259_p7 = scmp.ne.s32.totalorder %s343_s3, %s258_s15  ;;  %p262_p8 = scmp.lt.u32.totalorder %s258_s15, %s343_s3 }
 0x111   :  { %p264_p9 = pnand %p262_p8, %p259_p7 }
 0x113   :  { %267 = shalt.err (!%p264_p9)
}
 0x114   :  { %s279_s20 = smov 128   ;;  %s280_s21 = smov 8  }
 0x115   :  { %160 = dma.vmem_to_hbm [thread:$0]  %s155_s12, 512, %s343_s3, [#allocation4], %s279_s20, %s279_s20, %s280_s21  }
 0x116   :  { %272 = dma.done.wait [#allocation4], 512  }
 0x117   :  { %273 = vsyncadd [#allocation4], 4294966784 }
 0x118   :  { %164 = vsyncpa [#allocation3], 1 }
 0x119   :  { %165 = vsyncpa [#allocation6], 1 }
 0x11a   :  { %166 = vsyncpa [#allocation4], 1 }

</bundles_post_ra>
